<compile_context>
chip_gen: v7x
topology: tpu7x:2x2x1
jax: 0.10.0
libtpu: 0.0.40
codegen_flags: <defaults>
</compile_context>

<pallas_src>
import functools
import math

import jax
import jax.numpy as jnp
from jax.experimental import pallas as pl
from jax.experimental.pallas import tpu as pltpu


def _round_up(x, m):
    return (x + m - 1) // m * m


def _pick_tile(n, preferred, align):
    """Largest multiple of `align` dividing n and <= preferred, else n (full dim)."""
    t = min(preferred, n)
    t -= t % align
    while t >= align:
        if n % t == 0:
            return t
        t -= align
    return n


def _pick_head_block(n_head, dk):
    """Smallest head count hb dividing n_head with hb*dk a multiple of 128 (lane-dense
    output blocks); falls back to all heads (full model dim block, always legal)."""
    for hb in range(1, n_head + 1):
        if n_head % hb == 0 and (hb * dk) % 128 == 0:
            return hb
    return n_head


# ----------------------------- linear:  X @ W^T + b -----------------------------

def _linear_kernel(x_ref, w_ref, b_ref, o_ref, acc_ref):
    k = pl.program_id(2)

    @pl.when(k == 0)
    def _():
        acc_ref[...] = jnp.zeros_like(acc_ref)

    # x: (tm, tk), w: (tn, tk) in PyTorch Linear layout -> contract last dims of
    # both operands (transposed-RHS matmul); no weight transpose materialized.
    acc_ref[...] += jax.lax.dot_general(
        x_ref[...], w_ref[...], (((1,), (1,)), ((), ())),
        preferred_element_type=jnp.float32)

    @pl.when(k == pl.num_programs(2) - 1)
    def _():
        o_ref[...] = (acc_ref[...] + b_ref[...].astype(jnp.float32)).astype(o_ref.dtype)


def linear_pallas(x2, w, b, *, tm_pref=512, tn_pref=256, tk_pref=512):
    """x2: (R, Din), w: (Dout, Din) (PyTorch Linear layout), b: (Dout,) -> (R, Dout)."""
    R, Din = x2.shape
    Dout = w.shape[0]

    tm = min(tm_pref, _round_up(R, 8))
    Rp = _round_up(R, tm)
    if Rp != R:                          # pad odd row counts instead of asserting
        x2 = jnp.pad(x2, ((0, Rp - R), (0, 0)))
    tn = _pick_tile(Dout, tn_pref, 128)
    tk = _pick_tile(Din, tk_pref, 128)
    grid = (Rp // tm, Dout // tn, Din // tk)

    out = pl.pallas_call(
        _linear_kernel,
        out_shape=jax.ShapeDtypeStruct((Rp, Dout), x2.dtype),
        grid_spec=pltpu.PrefetchScalarGridSpec(
            num_scalar_prefetch=0,
            grid=grid,
            in_specs=[
                pl.BlockSpec((tm, tk), lambda i, j, k: (i, k)),
                pl.BlockSpec((tn, tk), lambda i, j, k: (j, k)),   # weight, untransposed
                pl.BlockSpec((1, tn), lambda i, j, k: (0, j)),
            ],
            out_specs=pl.BlockSpec((tm, tn), lambda i, j, k: (i, j)),
            scratch_shapes=[pltpu.VMEM((tm, tn), jnp.float32)],
        ),
        compiler_params=pltpu.CompilerParams(
            dimension_semantics=("parallel", "parallel", "arbitrary"),
            vmem_limit_bytes=64 << 20),
    )(x2, w, b.reshape(1, Dout))

    return out[:R] if Rp != R else out


# ------------------ flash attention (online softmax, packed heads) ------------------

def _flash_attn_body(mask_ref, q_ref, k_ref, v_ref, o_ref, m_sc, l_sc, acc_sc,
                     *, hb, dk, scale):
    ki = pl.program_id(3)

    @pl.when(ki == 0)
    def _():
        m_sc[...] = jnp.full_like(m_sc, -jnp.inf)
        l_sc[...] = jnp.zeros_like(l_sc)
        acc_sc[...] = jnp.zeros_like(acc_sc)

    q_all = q_ref[0]                  # (tq, hb*dk) in input dtype (bf16 feeds MXU)
    k_all = k_ref[0]                  # (tk, hb*dk)
    v_all = v_ref[0]                  # (tk, hb*dk)
    if mask_ref is not None:
        # int8 DMA; widen in-register (cheap VPU unpack) before the compare.
        msk = mask_ref[0].astype(jnp.int32)      # (tq, tk)

    for h in range(hb):               # static, small: heads packed per grid step
        cols = slice(h * dk, (h + 1) * dk)
        # fold 1/sqrt(dk) into q (a (tq, dk) tensor, not the (tq, tk) scores)
        q_h = q_all[:, cols] * jnp.asarray(scale, q_all.dtype)
        s = jax.lax.dot_general(q_h, k_all[:, cols],
                                (((1,), (1,)), ((), ())),
                                preferred_element_type=jnp.float32)   # (tq, tk) f32
        if mask_ref is not None:
            s = jnp.where(msk == 0, -1e9, s)     # torch masked_fill(mask == 0, -1e9)

        m_prev = m_sc[h]
        m_new = jnp.maximum(m_prev, jnp.max(s, axis=-1, keepdims=True))
        alpha = jnp.exp(m_prev - m_new)
        p = jnp.exp(s - m_new)
        l_sc[h] = alpha * l_sc[h] + jnp.sum(p, axis=-1, keepdims=True)
        pv = jnp.dot(p.astype(v_all.dtype), v_all[:, cols],
                     preferred_element_type=jnp.float32)              # (tq, dk)
        acc_sc[h] = alpha * acc_sc[h] + pv
        m_sc[h] = m_new

    @pl.when(ki == pl.num_programs(3) - 1)
    def _():
        # normalize the (tq, dk) context, not the (tq, tk) probabilities
        parts = [acc_sc[h] * pl.reciprocal(l_sc[h], approx=True) for h in range(hb)]
        ctx = parts[0] if hb == 1 else jnp.concatenate(parts, axis=-1)  # lane-dense
        o_ref[...] = ctx[None].astype(o_ref.dtype)


def _flash_attn_kernel(q_ref, k_ref, v_ref, o_ref, m_sc, l_sc, acc_sc, *, hb, dk, scale):
    _flash_attn_body(None, q_ref, k_ref, v_ref, o_ref, m_sc, l_sc, acc_sc,
                     hb=hb, dk=dk, scale=scale)


def _flash_attn_kernel_masked(mask_ref, q_ref, k_ref, v_ref, o_ref, m_sc, l_sc, acc_sc,
                              *, hb, dk, scale):
    _flash_attn_body(mask_ref, q_ref, k_ref, v_ref, o_ref, m_sc, l_sc, acc_sc,
                     hb=hb, dk=dk, scale=scale)


def attention_pallas(q, k, v, mask, n_head, *, tq_pref=256, tk_pref=512):
    """q: (B, Sq, H*dk), k/v: (B, Sk, H*dk); mask: None or (B, Sq, Sk) (nonzero = attend).
    Heads are addressed by last-dim column blocks; returns (B, Sq, H*dk)."""
    B, Sq, D = q.shape
    Sk = k.shape[1]
    dk = D // n_head
    hb = _pick_head_block(n_head, dk)
    G = n_head // hb
    hbdk = hb * dk
    scale = 1.0 / math.sqrt(dk)

    tq = _pick_tile(Sq, tq_pref, 8)
    tk = _pick_tile(Sk, tk_pref, 128)    # 128-aligned (mask lanes) or full Sk
    grid = (B, G, Sq // tq, Sk // tk)    # Sk reduction axis last ('arbitrary')

    q_spec = pl.BlockSpec((1, tq, hbdk), lambda b, g, qi, ki: (b, qi, g))
    kv_spec = pl.BlockSpec((1, tk, hbdk), lambda b, g, qi, ki: (b, ki, g))
    o_spec = pl.BlockSpec((1, tq, hbdk), lambda b, g, qi, ki: (b, qi, g))
    scratch = [pltpu.VMEM((hb, tq, 1), jnp.float32),    # running max
               pltpu.VMEM((hb, tq, 1), jnp.float32),    # running denom
               pltpu.VMEM((hb, tq, dk), jnp.float32)]   # running context

    if mask is None:
        kernel = functools.partial(_flash_attn_kernel, hb=hb, dk=dk, scale=scale)
        in_specs = [q_spec, kv_spec, kv_spec]
        operands = (q, k, v)
    else:
        # TODO(synk): for causal masks, generate the mask in-kernel from
        # broadcasted_iota + tile offsets instead of DMA-ing it at all.
        kernel = functools.partial(_flash_attn_kernel_masked, hb=hb, dk=dk, scale=scale)
        m_spec = pl.BlockSpec((1, tq, tk), lambda b, g, qi, ki: (b, qi, ki))
        in_specs = [m_spec, q_spec, kv_spec, kv_spec]
        operands = (mask.astype(jnp.int8), q, k, v)

    return pl.pallas_call(
        kernel,
        out_shape=jax.ShapeDtypeStruct((B, Sq, D), q.dtype),
        grid_spec=pltpu.PrefetchScalarGridSpec(
            num_scalar_prefetch=0,
            grid=grid,
            in_specs=in_specs,
            out_specs=o_spec,
            scratch_shapes=scratch,
        ),
        compiler_params=pltpu.CompilerParams(
            dimension_semantics=("parallel", "parallel", "parallel", "arbitrary"),
            vmem_limit_bytes=64 << 20),
    )(*operands)


# ----------------------------- full MHA forward -----------------------------

def multi_head_attention_pallas(params, n_head, query, key, value, mask=None,
                                *, tq_pref=256, tk_pref=512):
    B, Sq, D = query.shape
    Sk = key.shape[1]

    if (query is key) and (key is value):
        # Self-attention: one fused (R, 3D) projection -> activation read once.
        # (In a real model the weight concat would be done once at parameter init.)
        w_qkv = jnp.concatenate([params["wq"], params["wk"], params["wv"]], axis=0)
        b_qkv = jnp.concatenate([params["bq"], params["bk"], params["bv"]])
        qkv = linear_pallas(query.reshape(B * Sq, D), w_qkv, b_qkv)        # (R, 3D)
        q2, k2, v2 = qkv[:, :D], qkv[:, D:2 * D], qkv[:, 2 * D:]
    else:
        q2 = linear_pallas(query.reshape(B * Sq, D), params["wq"], params["bq"])
        k2 = linear_pallas(key.reshape(B * Sk, D), params["wk"], params["bk"])
        v2 = linear_pallas(value.reshape(B * Sk, D), params["wv"], params["bv"])

    # Keep (B, S, H*dk): head split/merge happens inside the attention BlockSpecs,
    # no transpose HBM round trips.
    qh = q2.reshape(B, Sq, D)
    kh = k2.reshape(B, Sk, D)
    vh = v2.reshape(B, Sk, D)

    # TODO(synk): attention-weight dropout (self.dropout) is identity in eval mode and
    # is omitted; training-mode dropout would use pltpu.prng_seed / pltpu.prng_random_bits.
    ctx = attention_pallas(qh, kh, vh, mask, n_head,
                           tq_pref=tq_pref, tk_pref=tk_pref)               # (B, Sq, D)

    out = linear_pallas(ctx.reshape(B * Sq, D), params["wo"], params["bo"])
    return out.reshape(B, Sq, D)


# ----------------------------- pure-JAX reference -----------------------------

def mha_ref(params, n_head, query, key, value, mask=None):
    def lin(x, w, b):
        return jnp.einsum("bsd,od->bso", x, w) + b

    B, Sq, D = query.shape
    dk = D // n_head
    q = lin(query, params["wq"], params["bq"]).reshape(B, Sq, n_head, dk).transpose(0, 2, 1, 3)
    k = lin(key, params["wk"], params["bk"]).reshape(B, -1, n_head, dk).transpose(0, 2, 1, 3)
    v = lin(value, params["wv"], params["bv"]).reshape(B, -1, n_head, dk).transpose(0, 2, 1, 3)

    s = jnp.einsum("bhqd,bhkd->bhqk", q, k) / math.sqrt(dk)
    if mask is not None:
        s = jnp.where(mask[:, None, :, :] == 0, -1e9, s)
    p = jax.nn.softmax(s, axis=-1)
    ctx = jnp.einsum("bhqk,bhkd->bhqd", p, v)
    ctx = ctx.transpose(0, 2, 1, 3).reshape(B, Sq, D)
    return lin(ctx, params["wo"], params["bo"])


if __name__ == "__main__":
    root = jax.random.PRNGKey(0)
    D, H = 32, 4                          # dim=32, n_head=4 -> d_k=8 (toy size)
    B, S = 2, 8

    ks = jax.random.split(root, 16)
    wscale = 1.0 / math.sqrt(D)
    params = {
        "wq": jax.random.normal(ks[0], (D, D), jnp.float32) * wscale,
        "bq": jax.random.normal(ks[1], (D,), jnp.float32) * 0.1,
        "wk": jax.random.normal(ks[2], (D, D), jnp.float32) * wscale,
        "bk": jax.random.normal(ks[3], (D,), jnp.float32) * 0.1,
        "wv": jax.random.normal(ks[4], (D, D), jnp.float32) * wscale,
        "bv": jax.random.normal(ks[5], (D,), jnp.float32) * 0.1,
        "wo": jax.random.normal(ks[6], (D, D), jnp.float32) * wscale,
        "bo": jax.random.normal(ks[7], (D,), jnp.float32) * 0.1,
    }

    # 1) self-attention (fused QKV projection), no mask
    x = jax.random.normal(ks[8], (B, S, D), jnp.float32)
    out = jax.block_until_ready(multi_head_attention_pallas(params, H, x, x, x, mask=None))
    ref = mha_ref(params, H, x, x, x, mask=None)
    assert out.shape == ref.shape and out.dtype == ref.dtype
    assert jnp.allclose(out, ref, atol=5e-3, rtol=5e-3), float(jnp.max(jnp.abs(out - ref)))

    # 2) cross-attention (separate projections), padding mask, Sk != Sq
    Skv = 16
    q_in = jax.random.normal(ks[9], (B, S, D), jnp.float32)
    k_in = jax.random.normal(ks[10], (B, Skv, D), jnp.float32)
    v_in = jax.random.normal(ks[11], (B, Skv, D), jnp.float32)
    mask2 = (jax.random.uniform(ks[12], (B, S, Skv)) > 0.3).astype(jnp.int32)
    out2 = jax.block_until_ready(
        multi_head_attention_pallas(params, H, q_in, k_in, v_in, mask=mask2))
    ref2 = mha_ref(params, H, q_in, k_in, v_in, mask=mask2)
    assert jnp.allclose(out2, ref2, atol=5e-3, rtol=5e-3), float(jnp.max(jnp.abs(out2 - ref2)))

    # 3) longer sequence: causal mask, multi-step flash (KV-tiled) path
    S3 = 256
    x3 = jax.random.normal(ks[13], (B, S3, D), jnp.float32)
    mask3 = jnp.broadcast_to(jnp.tril(jnp.ones((S3, S3), jnp.int32)), (B, S3, S3))
    out3 = jax.block_until_ready(
        multi_head_attention_pallas(params, H, x3, x3, x3, mask=mask3,
                                    tq_pref=128, tk_pref=128))
    ref3 = mha_ref(params, H, x3, x3, x3, mask=mask3)
    assert jnp.allclose(out3, ref3, atol=5e-3, rtol=5e-3), float(jnp.max(jnp.abs(out3 - ref3)))

    # 4) bf16 weights/activations (MXU-friendly feed), loose tolerance vs f32 ref
    params_bf = {name: val.astype(jnp.bfloat16) for name, val in params.items()}
    x_bf = x.astype(jnp.bfloat16)
    out4 = jax.block_until_ready(
        multi_head_attention_pallas(params_bf, H, x_bf, x_bf, x_bf, mask=None))
    assert out4.dtype == jnp.bfloat16
    assert jnp.allclose(out4.astype(jnp.float32), ref, atol=1e-1, rtol=1e-1), \
        float(jnp.max(jnp.abs(out4.astype(jnp.float32) - ref)))

    print("KERNEL_OK")
</pallas_src>

<mosaic_0001>
module attributes {stable_mosaic.version = 11 : i64} {
  func.func @_linear_kernel(%arg0: i32, %arg1: i32, %arg2: i32, %arg3: memref<16x32xf32, #tpu.memory_space<vmem>>, %arg4: memref<96x32xf32, #tpu.memory_space<vmem>>, %arg5: memref<1x96xf32, #tpu.memory_space<vmem>>, %arg6: memref<16x96xf32, #tpu.memory_space<vmem>>, %arg7: memref<16x96xf32, #tpu.memory_space<vmem>>) attributes {dimension_semantics = [#tpu.dimension_semantics<parallel>, #tpu.dimension_semantics<parallel>, #tpu.dimension_semantics<arbitrary>], iteration_bounds = array<i64: 1, 1, 1>, scalar_prefetch = 0 : i64, scratch_operands = 1 : i64, tpu.core_type = #tpu.core_type<tc>, window_params = [{transform_indices = @transform_0, window_bounds = array<i64: 16, 32>}, {transform_indices = @transform_1, window_bounds = array<i64: 96, 32>}, {transform_indices = @transform_2, window_bounds = array<i64: 1, 96>}, {transform_indices = @transform_3, window_bounds = array<i64: 16, 96>}]} {
    %c0_i32 = arith.constant 0 : i32
    %0 = arith.cmpi eq, %arg2, %c0_i32 : i32
    %1 = arith.extui %0 : i1 to i32
    %c0_i32_0 = arith.constant 0 : i32
    %2 = arith.cmpi ne, %1, %c0_i32_0 : i32
    scf.if %2 {
      %cst_10 = arith.constant 0.000000e+00 : f32
      %12 = vector.broadcast %cst_10 : f32 to vector<16x96xf32>
      %c0_11 = arith.constant 0 : index
      %c0_12 = arith.constant 0 : index
      %13 = vector.load %arg7[%c0_11, %c0_12] : memref<16x96xf32, #tpu.memory_space<vmem>>, vector<16x96xf32>
      tpu.vector_store %arg7[%c0_11, %c0_12], %12 {strides = array<i32>} : memref<16x96xf32, #tpu.memory_space<vmem>>, vector<16x96xf32>,
    } else {
    }
    %c0 = arith.constant 0 : index
    %c0_1 = arith.constant 0 : index
    %3 = vector.load %arg7[%c0, %c0_1] : memref<16x96xf32, #tpu.memory_space<vmem>>, vector<16x96xf32>
    %c0_2 = arith.constant 0 : index
    %c0_3 = arith.constant 0 : index
    %4 = vector.load %arg3[%c0_2, %c0_3] : memref<16x32xf32, #tpu.memory_space<vmem>>, vector<16x32xf32>
    %c0_4 = arith.constant 0 : index
    %c0_5 = arith.constant 0 : index
    %5 = vector.load %arg4[%c0_4, %c0_5] : memref<96x32xf32, #tpu.memory_space<vmem>>, vector<96x32xf32>
    %cst = arith.constant dense<0.000000e+00> : vector<16x96xf32>
    %6 = tpu.matmul %4, %5, %cst {dimension_numbers = #tpu.dot_dimension_numbers<[1], [1], [0], [0], [0, 0, 1, 0], [], []>} : vector<16x32xf32>, vector<96x32xf32>, vector<16x96xf32> -> vector<16x96xf32>
    %7 = arith.addf %3, %6 : vector<16x96xf32>
    %c0_6 = arith.constant 0 : index
    %c0_7 = arith.constant 0 : index
    %8 = vector.load %arg7[%c0_6, %c0_7] : memref<16x96xf32, #tpu.memory_space<vmem>>, vector<16x96xf32>
    tpu.vector_store %arg7[%c0_6, %c0_7], %7 {strides = array<i32>} : memref<16x96xf32, #tpu.memory_space<vmem>>, vector<16x96xf32>,
    %c0_i32_8 = arith.constant 0 : i32
    %9 = arith.cmpi eq, %arg2, %c0_i32_8 : i32
    %10 = arith.extui %9 : i1 to i32
    %c0_i32_9 = arith.constant 0 : i32
    %11 = arith.cmpi ne, %10, %c0_i32_9 : i32
    scf.if %11 {
      %c0_10 = arith.constant 0 : index
      %c0_11 = arith.constant 0 : index
      %12 = vector.load %arg7[%c0_10, %c0_11] : memref<16x96xf32, #tpu.memory_space<vmem>>, vector<16x96xf32>
      %c0_12 = arith.constant 0 : index
      %c0_13 = arith.constant 0 : index
      %13 = vector.load %arg5[%c0_12, %c0_13] : memref<1x96xf32, #tpu.memory_space<vmem>>, vector<1x96xf32>
      %14 = vector.broadcast %13 : vector<1x96xf32> to vector<16x96xf32>
      %15 = arith.addf %12, %14 : vector<16x96xf32>
      %c0_14 = arith.constant 0 : index
      %c0_15 = arith.constant 0 : index
      %16 = vector.load %arg6[%c0_14, %c0_15] : memref<16x96xf32, #tpu.memory_space<vmem>>, vector<16x96xf32>
      tpu.vector_store %arg6[%c0_14, %c0_15], %15 {strides = array<i32>} : memref<16x96xf32, #tpu.memory_space<vmem>>, vector<16x96xf32>,
    } else {
    }
    return
  }
  func.func @transform_0(%arg0: i32, %arg1: i32, %arg2: i32) -> (i32, i32) {
    %c0_i32 = arith.constant 0 : i32
    return %arg0, %arg2 : i32, i32
  }
  func.func @transform_1(%arg0: i32, %arg1: i32, %arg2: i32) -> (i32, i32) {
    %c0_i32 = arith.constant 0 : i32
    return %arg1, %arg2 : i32, i32
  }
  func.func @transform_2(%arg0: i32, %arg1: i32, %arg2: i32) -> (i32, i32) {
    %c0_i32 = arith.constant 0 : i32
    %c0_i32_0 = arith.constant 0 : i32
    return %c0_i32, %arg1 : i32, i32
  }
  func.func @transform_3(%arg0: i32, %arg1: i32, %arg2: i32) -> (i32, i32) {
    %c0_i32 = arith.constant 0 : i32
    return %arg0, %arg1 : i32, i32
  }
}

</mosaic_0001>

<bundles_post_ra>
// kernel: tpu_custom_call.1
= control target key start
LH: loop header
LB: loop body
LE: loop exit
PB: predicated region body
PF: predicated region fallthrough
CT: control target
= control target key end

     0   :  { %8 = vsyncpa [#allocation4], 0  ;;  %s556_s0 = inlined_call_operand.hbm [shape: f32[16,32], index: 0, kind: input, shape index: {}]   ;;  %s557_s1 = inlined_call_operand.hbm [shape: f32[96,32], index: 1, kind: input, shape index: {}]   ;;  %s558_s2 = inlined_call_operand.hbm [shape: f32[1,96], index: 2, kind: input, shape index: {}]   ;;  %s559_s3 = inlined_call_operand.hbm [shape: f32[16,96], index: 3, kind: output, shape index: {}]  }
   0x1   :  { %9 = vsyncpa [#allocation7], 0 }
   0x2   :  { %10 = vsyncpa [#allocation5], 0  ;;  %s427_s12 = smov [#allocation6]   ;;  %s428_s14 = smov [#allocation3]  }
   0x3   :  { %s28_s13 = sshll.u32 %s427_s12, 4  ;;  %s16_s15 = sshll.u32 %s428_s14, 4  ;;  %s29_s13 = int_to_ptr.vmem [resolvable:$true] %s28_s13  ;;  %s454_s15 = int_to_ptr.vmem [resolvable:$true] %s16_s15 }
   0x4   :  { %s333_s18 = scalar_lea.hbm %s557_s1, 1536 }
   0x5   :  { %p334_p0 = scmp.ne.s32.totalorder %s557_s1, %s333_s18  ;;  %p337_p1 = scmp.lt.u32.totalorder %s333_s18, %s557_s1 }
   0x7   :  { %p339_p2 = pnand %p337_p1, %p334_p0 }
   0x9   :  { %342 = shalt.err (!%p339_p2)
}
   0xa   :  { %s343_s23 = scalar_lea.vmem %s29_s13, 1536  ;;  %p348_p4 = scmp.lt.s32.totalorder %s29_s13, %s29_s13 }
   0xb   :  { %p344_p3 = scmp.ne.s32.totalorder %s29_s13, %s343_s23  ;;  %p349_p5 = scmp.lt.s32.totalorder %s343_s23, %s343_s23 }
   0xd   :  { %p350_p6 = por %p349_p5, %p348_p4 }
   0xf   :  { %p351_p7 = pnand %p350_p6, %p344_p3 }
  0x11   :  { %354 = shalt.err (!%p351_p7)
}
  0x12   :  { %s429_s24 = smov 128   ;;  %s430_s25 = smov 8  }
  0x13   :  { %34 = dma.hbm_to_vmem [thread:$0]  %s557_s1, 1536, %s29_s13, [#allocation7], %s429_s24, %s429_s24, %s430_s25  }
  0x14   :  { %s355_s30 = scalar_lea.hbm %s556_s0, 256 }
  0x15   :  { %p356_p8 = scmp.ne.s32.totalorder %s556_s0, %s355_s30  ;;  %p359_p9 = scmp.lt.u32.totalorder %s355_s30, %s556_s0 }
  0x17   :  { %p361_p10 = pnand %p359_p9, %p356_p8 }
  0x19   :  { %364 = shalt.err (!%p361_p10)
}
  0x1a   :  { %s365_s8 = scalar_lea.vmem %s454_s15, 256  ;;  %p370_p12 = scmp.lt.s32.totalorder %s454_s15, %s454_s15 }
  0x1b   :  { %p366_p11 = scmp.ne.s32.totalorder %s454_s15, %s365_s8  ;;  %p371_p13 = scmp.lt.s32.totalorder %s365_s8, %s365_s8 }
  0x1d   :  { %p372_p0 = por %p371_p13, %p370_p12 }
  0x1f   :  { %p373_p1 = pnand %p372_p0, %p366_p11 }
  0x21   :  { %376 = shalt.err (!%p373_p1)
}
  0x22   :  { %22 = dma.hbm_to_vmem [thread:$0]  %s556_s0, 256, %s454_s15, [#allocation4], %s429_s24, %s429_s24, %s430_s25  }
  0x23   :  { %s431_s10 = smov [#allocation8]   ;;  %s377_s14 = scalar_lea.hbm %s558_s2, 16 }
  0x24   :  { %s41_s11 = sshll.u32 %s431_s10, 4  ;;  %p378_p2 = scmp.ne.s32.totalorder %s558_s2, %s377_s14  ;;  %s42_s11 = int_to_ptr.vmem [resolvable:$true] %s41_s11 }
  0x25   :  { %p381_p3 = scmp.lt.u32.totalorder %s377_s14, %s558_s2 }
  0x27   :  { %p383_p4 = pnand %p381_p3, %p378_p2 }
  0x29   :  { %386 = shalt.err (!%p383_p4)
}
  0x2a   :  { %s387_s20 = scalar_lea.vmem %s42_s11, 16  ;;  %s391_s0 = scalar_lea.vmem %s42_s11, 32 }
  0x2b   :  { %p388_p5 = scmp.ne.s32.totalorder %s42_s11, %s387_s20  ;;  %p392_p6 = scmp.lt.s32.totalorder %s42_s11, %s42_s11 }
  0x2c   :  { %p393_p7 = scmp.lt.s32.totalorder %s391_s0, %s387_s20 }
  0x2e   :  { %p394_p8 = por %p393_p7, %p392_p6 }
  0x30   :  { %p395_p9 = pnand %p394_p8, %p388_p5 }
  0x32   :  { %398 = shalt.err (!%p395_p9)
}
  0x33   :  { %44 = dma.hbm_to_vmem [thread:$0]  %s558_s2, 16, %s42_s11, [#allocation7]  }
  0x34   :  { %421 = dma.done.wait [#allocation4], 256  }
  0x35   :  { %422 = vsyncadd [#allocation4], 4294967040 }
  0x36   :  { %423 = dma.done.wait [#allocation7], 1552  }
  0x37   :  { %424 = vsyncadd [#allocation7], 4294965744  ;;  %vm58_vm0 = vcmask 785408   ;;  %v432_v0 = vmov 0.0   ;;  %vm77_vm1 = vcmask 261120   ;;  %v65_v2 = vld [vmem:[#allocation6] sm:$0xff] }
  0x38   :  { %60 = vst.msk [vmem:[#allocation2 + $0x8] sm:$0xff] %vm58_vm0, %v432_v0  ;;  %59 = vst.msk [vmem:[#allocation2] sm:$0xff] %vm58_vm0, %v432_v0  ;;  %v66_v3 = vld [vmem:[#allocation6 + $0x8] sm:$0xff]  ;;  %v67_v4 = vld [vmem:[#allocation6 + $0x10] sm:$0xff]  ;;  %s433_s2 = smov [#allocation9]  }
  0x39   :  { %vm507_vm2 = vmpackc.low %vm77_vm1, %vm77_vm1  ;;  %v290_v5 = vpack.c.bf16 %v66_v3, %v65_v2  ;;  %v68_v6 = vld [vmem:[#allocation6 + $0x18] sm:$0xff]  ;;  %v63_v8 = vld [vmem:[#allocation3] sm:$0xff]  ;;  %s221_s22 = sshll.u32 %s433_s2, 4  ;;  %s222_s22 = int_to_ptr.vmem [resolvable:$true] %s221_s22 }
  0x3a   :  { %v296_v7 = vpack.c.bf16 %v68_v6, %v67_v4  ;;  %287 = vmatprep.mubr.msk.f32.mxu0 %vm77_vm1, %v63_v8  ;;  %v69_v9 = vld [vmem:[#allocation6 + $0x20] sm:$0xff]  ;;  %v70_v10 = vld [vmem:[#allocation6 + $0x28] sm:$0xff]  ;;  %v71_v12 = vld [vmem:[#allocation6 + $0x30] sm:$0xff]  ;;  %s399_s23 = scalar_lea.vmem %s222_s22, 256  ;;  %p404_p11 = scmp.lt.s32.totalorder %s222_s22, %s222_s22 }
  0x3b   :  { %292 = vmatprep.subr.msk.bf16.mxu0 %vm507_vm2, %v290_v5  ;;  %v302_v11 = vpack.c.bf16 %v70_v10, %v69_v9  ;;  %v72_v13 = vld [vmem:[#allocation6 + $0x38] sm:$0xff]  ;;  %v73_v15 = vld [vmem:[#allocation6 + $0x40] sm:$0xff]  ;;  %v74_v16 = vld [vmem:[#allocation6 + $0x48] sm:$0xff]  ;;  %p400_p10 = scmp.ne.s32.totalorder %s222_s22, %s399_s23  ;;  %p405_p12 = scmp.lt.s32.totalorder %s399_s23, %s399_s23 }
  0x3c   :  { %295 = vmatpush3.bf16.xpose.msk.msra.mxu0 %vm507_vm2, %v290_v5  ;;  %v308_v14 = vpack.c.bf16 %v72_v13, %v71_v12  ;;  %v314_v17 = vpack.c.bf16 %v74_v16, %v73_v15  ;;  %v75_v18 = vld [vmem:[#allocation6 + $0x50] sm:$0xff]  ;;  %v76_v19 = vld [vmem:[#allocation6 + $0x58] sm:$0xff]  ;;  %v248_v28 = vld [vmem:[#allocation8] ss:$0 sm:$0xff] }
  0x3d   :  { %298 = vmatprep.subr.msk.bf16.mxu0 %vm507_vm2, %v296_v7  ;;  %v320_v20 = vpack.c.bf16 %v76_v19, %v75_v18  ;;  %v64_v21 = vld [vmem:[#allocation3 + $0x8] sm:$0xff]  ;;  %p406_p13 = por %p405_p12, %p404_p11 }
  0x3f   :  { %v62_v22 = vld [vmem:[#allocation2 + $0x8] sm:$0xff]  ;;  %v61_v23 = vld [vmem:[#allocation2] sm:$0xff]  ;;  %p407_p0 = pnand %p406_p13, %p400_p10 }
  0x44   :  { %301 = vmatpush3.bf16.xpose.msk.msra.mxu0 %vm507_vm2, %v296_v7 }
  0x45   :  { %304 = vmatprep.subr.msk.bf16.mxu0 %vm507_vm2, %v302_v11 }
  0x4c   :  { %307 = vmatpush3.bf16.xpose.msk.msra.mxu0 %vm507_vm2, %v302_v11 }
  0x4d   :  { %310 = vmatprep.subr.msk.bf16.mxu0 %vm507_vm2, %v308_v14 }
  0x54   :  { %313 = vmatpush3.bf16.xpose.msk.msra.mxu0 %vm507_vm2, %v308_v14 }
  0x55   :  { %316 = vmatprep.subr.msk.bf16.mxu0 %vm507_vm2, %v314_v17 }
  0x5c   :  { %319 = vmatpush3.bf16.xpose.msk.msra.mxu0 %vm507_vm2, %v314_v17 }
  0x5d   :  { %322 = vmatprep.subr.msk.bf16.mxu0 %vm507_vm2, %v320_v20 }
  0x64   :  { %325 = vmatpush3.bf16.xpose.msk.msra.mxu0 %vm507_vm2, %v320_v20 }
  0x6b   :  { %288 = vmatmul.mubr.msk.f32.vlgmr.msra.gmra.mrb[0].mxu0 %vm77_vm1, %v64_v21 }
 0x13e   :  { %v289_v24 = vpop.f32.mrb[0].mxu0 }
 0x13f   :  { %v196_v25 = vadd.f32 %v289_v24, %v62_v22  ;;  %v186_v26 = vpop.f32.mrb[1].mxu0 }
 0x140   :  { %v195_v27 = vadd.f32 %v186_v26, %v61_v23 }
 0x141   :  { %199 = vst.msk [vmem:[#allocation2 + $0x8] sm:$0xff] %vm58_vm0, %v196_v25 }
 0x142   :  { %198 = vst.msk [vmem:[#allocation2] sm:$0xff] %vm58_vm0, %v195_v27 }
 0x148   :  { %v204_v29 = vld [vmem:[#allocation2 + $0x8] sm:$0xff] }
 0x149   :  { %v203_v30 = vld [vmem:[#allocation2] sm:$0xff]  ;;  %v213_v31 = vadd.f32 %v248_v28, %v204_v29 }
 0x14a   :  { %v212_v32 = vadd.f32 %v248_v28, %v203_v30 }
 0x14b   :  { %215 = vst.msk [vmem:[#allocation9 + $0x8] sm:$0xff] %vm58_vm0, %v213_v31 }
 0x14c   :  { %214 = vst.msk [vmem:[#allocation9] sm:$0xff] %vm58_vm0, %v212_v32 }
 0x14d   :  { %410 = shalt.err (!%p407_p0)
}
 0x14e   :  { %s411_s28 = scalar_lea.hbm %s559_s3, 256 }
 0x14f   :  { %p412_p1 = scmp.ne.s32.totalorder %s559_s3, %s411_s28  ;;  %p415_p2 = scmp.lt.u32.totalorder %s411_s28, %s559_s3 }
 0x151   :  { %p417_p3 = pnand %p415_p2, %p412_p1 }
 0x153   :  { %420 = shalt.err (!%p417_p3)
}
 0x154   :  { %227 = dma.vmem_to_hbm [thread:$0]  %s222_s22, 256, %s559_s3, [#allocation5], %s429_s24, %s429_s24, %s430_s25  }
 0x155   :  { %425 = dma.done.wait [#allocation5], 256  }
 0x156   :  { %426 = vsyncadd [#allocation5], 4294967040 }
 0x157   :  { %231 = vsyncpa [#allocation4], 1 }
 0x158   :  { %232 = vsyncpa [#allocation7], 1 }
 0x159   :  { %233 = vsyncpa [#allocation5], 1 }

</bundles_post_ra>
